<compile_context>
chip_gen: v6e
topology: v6e:2x2x1
jax: 0.10.0
libtpu: 0.0.40
codegen_flags: <defaults>
</compile_context>

<pallas_src>
import jax
import jax.numpy as jnp
from jax.experimental import pallas as pl
from jax.experimental.pallas import tpu as pltpu

LANE = 512             # lane-dense flattened width (multiple of 128)
MAX_BLOCK_ROWS = 2048  # (2048, 512) f32 = 4 MiB/block -> 16 MiB double-buffered (fits v7x)
NCORES = 2             # leading 'parallel' axis; shards across v7x's 2 TCs, harmless on v5e/v6e


def _l1_partial_sum_kernel(g_ref, p_ref, acc_ref):
    i = pl.program_id(1)  # inner 'arbitrary' (accumulation) axis

    @pl.when(i == 0)
    def _():
        acc_ref[...] = jnp.zeros_like(acc_ref)

    g = g_ref[...]
    p = p_ref[...]
    if g.dtype != jnp.float32:  # upcast only when needed (bf16/fp16 inputs)
        g = g.astype(jnp.float32)
        p = p.astype(jnp.float32)
    diff = jnp.abs(p - g)

    tm, lane = diff.shape
    # Fold the (tm, lane) block into the resident (1, 8, lane) accumulator with
    # elementwise vreg adds only; the single cross-lane reduce happens outside.
    acc_ref[...] += jnp.sum(diff.reshape(tm // 8, 8, lane), axis=0)[None]


def _round_up(x, n):
    return -(-x // n) * n


def l1_loss(gts, preds, *, lane=LANE, max_block_rows=MAX_BLOCK_ROWS, ncores=NCORES):
    """mean over leading dims of sum over last dim of |preds - gts|."""
    assert gts.shape == preds.shape, "gts/preds must have identical shapes"
    assert gts.dtype == preds.dtype

    last_dim = gts.shape[-1]
    numel = 1
    for s in gts.shape:
        numel *= s
    num_rows = numel // last_dim  # divisor of the final mean

    # Lane-dense flattening + zero padding (|0 - 0| = 0, so padding is exact).
    rows = pl.cdiv(numel, lane)
    tm = max(8, min(max_block_rows, _round_up(pl.cdiv(rows, ncores), 8)))
    padded_rows = _round_up(rows, ncores * tm)
    inner = padded_rows // (ncores * tm)

    g = gts.reshape(-1)
    p = preds.reshape(-1)
    pad = padded_rows * lane - numel
    if pad:
        g = jnp.pad(g, (0, pad))
        p = jnp.pad(p, (0, pad))
    g2 = g.reshape(padded_rows, lane)
    p2 = p.reshape(padded_rows, lane)

    in_map = lambda c, i: (c * inner + i, 0)

    partials = pl.pallas_call(
        _l1_partial_sum_kernel,
        out_shape=jax.ShapeDtypeStruct((ncores, 8, lane), jnp.float32),
        grid_spec=pltpu.PrefetchScalarGridSpec(
            num_scalar_prefetch=0,
            grid=(ncores, inner),
            in_specs=[
                pl.BlockSpec((tm, lane), in_map),
                pl.BlockSpec((tm, lane), in_map),
            ],
            out_specs=pl.BlockSpec((1, 8, lane), lambda c, i: (c, 0, 0)),
        ),
        compiler_params=pltpu.CompilerParams(
            dimension_semantics=("parallel", "arbitrary"),
        ),
    )(g2, p2)

    # Tiny final reduction (ncores * 8 * lane elements) + mean divide in XLA.
    return jnp.sum(partials) / jnp.float32(num_rows)


def l1_loss_ref(gts, preds):
    return jnp.mean(jnp.sum(jnp.abs(preds - gts), axis=-1))


if __name__ == "__main__":
    key = jax.random.PRNGKey(0)
    k1, k2, k3, k4 = jax.random.split(key, 4)

    # Small shapes consistent with the module: batch=2, seq=8, hidden=32.
    gts = jax.random.normal(k1, (2, 8, 32), dtype=jnp.float32)
    preds = jax.random.normal(k2, (2, 8, 32), dtype=jnp.float32)
    out = jax.block_until_ready(l1_loss(gts, preds))
    ref = l1_loss_ref(gts, preds)
    assert jnp.allclose(out, ref, rtol=1e-5, atol=1e-5), (out, ref)

    # Ragged shape + tiny block size to exercise the zero-padding path and the
    # multi-step accumulation along the inner 'arbitrary' axis.
    gts2 = jax.random.normal(k3, (4, 64, 48), dtype=jnp.float32)
    preds2 = jax.random.normal(k4, (4, 64, 48), dtype=jnp.float32)
    out2 = jax.block_until_ready(l1_loss(gts2, preds2, max_block_rows=8))
    ref2 = l1_loss_ref(gts2, preds2)
    assert jnp.allclose(out2, ref2, rtol=1e-5, atol=1e-5), (out2, ref2)

    print("KERNEL_OK")
</pallas_src>

<mosaic_0001>
module attributes {stable_mosaic.version = 11 : i64} {
  func.func @_l1_partial_sum_kernel(%arg0: i32, %arg1: i32, %arg2: memref<8x512xf32, #tpu.memory_space<vmem>>, %arg3: memref<8x512xf32, #tpu.memory_space<vmem>>, %arg4: memref<1x8x512xf32, #tpu.memory_space<vmem>>) attributes {dimension_semantics = [#tpu.dimension_semantics<parallel>, #tpu.dimension_semantics<arbitrary>], iteration_bounds = array<i64: 2, 1>, scalar_prefetch = 0 : i64, scratch_operands = 0 : i64, tpu.core_type = #tpu.core_type<tc>, window_params = [{transform_indices = @transform_0, window_bounds = array<i64: 8, 512>}, {transform_indices = @transform_1, window_bounds = array<i64: 8, 512>}, {transform_indices = @transform_2, window_bounds = array<i64: 1, 8, 512>}]} {
    %c0_i32 = arith.constant 0 : i32
    %0 = arith.cmpi eq, %arg1, %c0_i32 : i32
    %1 = arith.extui %0 : i1 to i32
    %c0_i32_0 = arith.constant 0 : i32
    %2 = arith.cmpi ne, %1, %c0_i32_0 : i32
    scf.if %2 {
      %cst_10 = arith.constant 0.000000e+00 : f32
      %13 = vector.broadcast %cst_10 : f32 to vector<1x8x512xf32>
      %c0_11 = arith.constant 0 : index
      %c0_12 = arith.constant 0 : index
      %c0_13 = arith.constant 0 : index
      %14 = vector.load %arg4[%c0_11, %c0_12, %c0_13] : memref<1x8x512xf32, #tpu.memory_space<vmem>>, vector<1x8x512xf32>
      tpu.vector_store %arg4[%c0_11, %c0_12, %c0_13], %13 {strides = array<i32>} : memref<1x8x512xf32, #tpu.memory_space<vmem>>, vector<1x8x512xf32>,
    } else {
    }
    %c0 = arith.constant 0 : index
    %c0_1 = arith.constant 0 : index
    %3 = vector.load %arg2[%c0, %c0_1] : memref<8x512xf32, #tpu.memory_space<vmem>>, vector<8x512xf32>
    %c0_2 = arith.constant 0 : index
    %c0_3 = arith.constant 0 : index
    %4 = vector.load %arg3[%c0_2, %c0_3] : memref<8x512xf32, #tpu.memory_space<vmem>>, vector<8x512xf32>
    %5 = arith.subf %4, %3 : vector<8x512xf32>
    %6 = math.absf %5 : vector<8x512xf32>
    %c0_4 = arith.constant 0 : index
    %c0_5 = arith.constant 0 : index
    %c0_6 = arith.constant 0 : index
    %7 = vector.load %arg4[%c0_4, %c0_5, %c0_6] : memref<1x8x512xf32, #tpu.memory_space<vmem>>, vector<1x8x512xf32>
    %8 = vector.shape_cast %6 : vector<8x512xf32> to vector<1x8x512xf32>
    %cst = arith.constant dense<0.000000e+00> : vector<8x512xf32>
    %9 = vector.multi_reduction <add>, %8, %cst [0] : vector<1x8x512xf32> to vector<8x512xf32>
    %10 = vector.shape_cast %9 : vector<8x512xf32> to vector<1x8x512xf32>
    %11 = arith.addf %7, %10 : vector<1x8x512xf32>
    %c0_7 = arith.constant 0 : index
    %c0_8 = arith.constant 0 : index
    %c0_9 = arith.constant 0 : index
    %12 = vector.load %arg4[%c0_7, %c0_8, %c0_9] : memref<1x8x512xf32, #tpu.memory_space<vmem>>, vector<1x8x512xf32>
    tpu.vector_store %arg4[%c0_7, %c0_8, %c0_9], %11 {strides = array<i32>} : memref<1x8x512xf32, #tpu.memory_space<vmem>>, vector<1x8x512xf32>,
    return
  }
  func.func @transform_0(%arg0: i32, %arg1: i32) -> (i32, i32) {
    %c1_i32 = arith.constant 1 : i32
    %0 = arith.muli %arg0, %c1_i32 : i32
    %1 = arith.addi %0, %arg1 : i32
    %c0_i32 = arith.constant 0 : i32
    %c0_i32_0 = arith.constant 0 : i32
    return %1, %c0_i32 : i32, i32
  }
  func.func @transform_1(%arg0: i32, %arg1: i32) -> (i32, i32) {
    %c1_i32 = arith.constant 1 : i32
    %0 = arith.muli %arg0, %c1_i32 : i32
    %1 = arith.addi %0, %arg1 : i32
    %c0_i32 = arith.constant 0 : i32
    %c0_i32_0 = arith.constant 0 : i32
    return %1, %c0_i32 : i32, i32
  }
  func.func @transform_2(%arg0: i32, %arg1: i32) -> (i32, i32, i32) {
    %c0_i32 = arith.constant 0 : i32
    %c0_i32_0 = arith.constant 0 : i32
    %c0_i32_1 = arith.constant 0 : i32
    return %arg0, %c0_i32, %c0_i32_0 : i32, i32, i32
  }
}

</mosaic_0001>

<bundles_post_ra>
// kernel: tpu_custom_call.1
= control target key start
LH: loop header
LB: loop body
LE: loop exit
PB: predicated region body
PF: predicated region fallthrough
CT: control target
= control target key end

     0   :  { %7 = vsyncpa [#allocation3], 0  ;;  %s799_s0 = inlined_call_operand.hbm [shape: f32[16,512], index: 0, kind: input, shape index: {}]   ;;  %s800_s1 = inlined_call_operand.hbm [shape: f32[16,512], index: 1, kind: input, shape index: {}]   ;;  %s801_s2 = inlined_call_operand.hbm [shape: f32[2,8,512], index: 2, kind: output, shape index: {}]  }
   0x1   :  { %9 = vsyncpa [#allocation3 + $0x1], 0 }
   0x2   :  { %10 = vsyncpa [#allocation6], 0 }
   0x3   :  { %12 = vsyncpa [#allocation6 + $0x1], 0 }
   0x4   :  { %13 = vsyncpa [#allocation4], 0 }
   0x5   :  { %15 = vsyncpa [#allocation4 + $0x1], 0  ;;  %s626_s9 = smov 0   ;;  %s628_s10 = smov 0  }
   0x6   :  { %s630_s11 = smov 0   ;;  %s632_s12 = smov 0  }
   0x7   :  { %s634_s13 = smov 0   ;;  %s636_s14 = smov 0  }
   0x8 LB: > { %s376_s15 = sadd.s32 4294967295, %s606_s14   ;;  %s377_s16 = sadd.s32 4294967294, %s606_s14   ;;  %s606_s14 = sphi %s636_s14, %s21_s14   ;;  %s602_s13 = sphi %s634_s13, %s813_s13   ;;  %s598_s12 = sphi %s632_s12, %s812_s12   ;;  %s594_s11 = sphi %s630_s11, %s811_s11   ;;  %s590_s10 = sphi %s628_s10, %s810_s10   ;;  %s586_s9 = sphi %s626_s9, %s809_s9  }
   0x9   : > { %s33_s17 = sadd.s32 1, %s602_s13  ;;  %s42_s18 = sadd.s32 1, %s594_s11 }
   0xa   : > { %p35_p0 = scmp.ge.s32.totalorder %s33_s17, 2  ;;  %p49_p1 = scmp.ne.s32.totalorder %s594_s11, %s590_s10 }
   0xb   : > { %p50_p2 = scmp.eq.s32.totalorder %s606_s14, 0  ;;  %p55_p3 = scmp.ne.s32.totalorder %s590_s10, %s586_s9 }
   0xc   : > { %s815_s17 = smov (%p35_p0, %s33_s17), 0  ;;  %p56_p5 = scmp.eq.s32.totalorder %s376_s15, 0 }
   0xd   : > { %p667_p4 = por %p50_p2, %p49_p1  ;;  %s39_s20 = ssub.s32 %s602_s13, %s815_s17 }
   0xe   : > { %p107_p6 = scmp.eq.s32.totalorder %s376_s15, 1  ;;  %p40_p7 = scmp.eq.s32.totalorder %s39_s20, 0 }
   0xf   : > { %p673_p8 = por %p56_p5, %p55_p3  ;;  %p113_p10 = scmp.eq.s32.totalorder %s377_s16, 1 }
  0x10   : > { %p677_p9 = por %p107_p6, %p49_p1  ;;  %p415_p13 = scmp.lt.s32.totalorder %s606_s14, 2 }
  0x11   : > { %s682_s23 = scalar_select %p40_p7, %s594_s11, %s42_s18  }
  0x12   : > { %p684_p11 = por %p113_p10, %p55_p3  ;;  %s691_s25 = sand.u32 1, %s594_s11  }
  0x13   : > { %s380_s26 = sshll.u32 %s691_s25, 5  ;;  %s395_s27 = sshll.u32 %s602_s13, 9 }
  0x14   : > { %s144_s30 = scalar_lea.hbm %s799_s0, %s395_s27  ;;  %s137_s3 = scalar_lea.vmem [#allocation2], %s380_s26 }
  0x15   : > { %s146_s4 = sshll.u32 %s137_s3, 4  ;;  %p700_p0 = pnand %p415_p13, %p667_p4  ;;  %s147_s4 = int_to_ptr.vmem [resolvable:$true] %s146_s4 }
  0x16   : > { %p386_p1 = scmp.ge.s32.totalorder %s606_s14, 1  ;;  %p171_p2 = scmp.lt.s32.totalorder %s606_s14, 3 }
  0x17   : > { %s134_s6 = scalar_lea.sflag [#allocation3], %s691_s25  ;;  %p468_p3 = pneg %p700_p0 }
  0x18   : > { %s479_s7 = scalar_lea.vmem %s147_s4, 512  ;;  %s608_s8 = smov [#allocation2]  }
  0x19   : > { %p480_p5 = scmp.ne.s32.totalorder %s147_s4, %s479_s7  ;;  %s484_s15 = sshll.u32 %s608_s8, 4  ;;  %s485_s15 = int_to_ptr.vmem [resolvable:$false] %s484_s15 }
  0x1a   : > { %s486_s16 = scalar_lea.vmem %s485_s15, 1024  ;;  %p487_p4 = scmp.lt.s32.totalorder %s147_s4, %s485_s15 }
  0x1b   : > { %p482_p6 = pnand %p480_p5, %p468_p3  ;;  %p488_p10 = scmp.lt.s32.totalorder %s486_s16, %s479_s7 }
  0x1d   : > { %p483_p7 = pneg %p482_p6  ;;  %p489_p13 = por %p488_p10, %p487_p4 }
  0x1f   : > { %p490_p12 = pnand %p489_p13, %p483_p7 }
  0x21   : > { %493 = shalt.err (!%p490_p12)
}
  0x22   : > { %407 = dma.hbm_to_vmem [thread:$0]  (!%p700_p0), %s144_s30, 512, %s147_s4, %s134_s6  }
  0x23   : > { %p718_p5 = pnand %p386_p1, %p171_p2  ;;  %s164_s28 = scalar_lea.hbm %s800_s1, %s395_s27 }
  0x24   : > { %s157_s29 = scalar_lea.vmem [#allocation5], %s380_s26  ;;  %s154_s7 = scalar_lea.sflag [#allocation6], %s691_s25 }
  0x25   : > { %s166_s3 = sshll.u32 %s157_s29, 4  ;;  %s609_s30 = smov [#allocation5]   ;;  %s167_s3 = int_to_ptr.vmem [resolvable:$true] %s166_s3 }
  0x26   : > { %s507_s8 = scalar_lea.vmem %s167_s3, 512  ;;  %s512_s4 = sshll.u32 %s609_s30, 4  ;;  %s513_s4 = int_to_ptr.vmem [resolvable:$false] %s512_s4 }
  0x27   : > { %p508_p12 = scmp.ne.s32.totalorder %s167_s3, %s507_s8  ;;  %s514_s6 = scalar_lea.vmem %s513_s4, 1024 }
  0x28   : > { %p515_p1 = scmp.lt.s32.totalorder %s167_s3, %s513_s4  ;;  %p516_p2 = scmp.lt.s32.totalorder %s514_s6, %s507_s8 }
  0x29   : > { %p510_p6 = pnand %p508_p12, %p468_p3 }
  0x2a   : > { %p517_p4 = por %p516_p2, %p515_p1 }
  0x2b   : > { %p511_p7 = pneg %p510_p6 }
  0x2d   : > { %p518_p10 = pnand %p517_p4, %p511_p7 }
  0x2f   : > { %521 = shalt.err (!%p518_p10)
}
  0x30   : > { %410 = dma.hbm_to_vmem [thread:$0]  (!%p700_p0), %s164_s28, 512, %s167_s3, %s154_s7  }
  0x31   : > { %175 = sbr.rel (%p718_p5) target bundleno = 81 (0x51), region = 28  ;;  %s734_s25 = sand.u32 (!%p718_p5), 1, %s590_s10  }
  0x32   : > { %s387_s26 = sshll.u32 (!%p718_p5), %s734_s25, 5  ;;  %s178_s27 = scalar_lea.sflag (!%p718_p5), [#allocation3], %s734_s25 }
  0x33   : > { %s181_s15 = scalar_lea.vmem (!%p718_p5), [#allocation2], %s387_s26 }
  0x36   : > { %573 = dma.done.wait (%p673_p8), %s178_s27, 512  }
  0x37   : > { %575 = vsyncadd (%p673_p8), %s178_s27, 4294966784  ;;  %s187_s5 = scalar_lea.sflag [#allocation6], %s734_s25  ;;  %s190_s16 = scalar_lea.vmem [#allocation5], %s387_s26 }
  0x38   : > { %577 = dma.done.wait (%p673_p8), %s187_s5, 512  }
  0x39   : > { %579 = vsyncadd (%p673_p8), %s187_s5, 4294966784  ;;  %v226_v0 = vld [vmem:[%s181_s15] sm:$0xff]  ;;  %v227_v2 = vld [vmem:[%s181_s15 + $0x8] sm:$0xff]  ;;  %s397_s21 = sshll.u32 %s598_s12, 9  ;;  %s215_s18 = scalar_lea.vmem [#allocation7], %s387_s26 }
  0x3a   : > { %v230_v1 = vld [vmem:[%s190_s16] sm:$0xff]  ;;  %v231_v4 = vld [vmem:[%s190_s16 + $0x8] sm:$0xff]  ;;  %v228_v5 = vld [vmem:[%s181_s15 + $0x10] sm:$0xff]  ;;  %s273_s19 = sshll.u32 %s215_s18, 4  ;;  %s751_s29 = scalar_lea.hbm %s801_s2, %s397_s21  ;;  %s753_s19 = int_to_ptr.vmem [resolvable:$true] %s273_s19 }
  0x3b   : > { %v234_v3 = vsub.f32 %v230_v1, %v226_v0  ;;  %v232_v6 = vld [vmem:[%s190_s16 + $0x10] sm:$0xff]  ;;  %v235_v7 = vsub.f32 %v231_v4, %v227_v2  ;;  %v229_v9 = vld [vmem:[%s181_s15 + $0x18] sm:$0xff]  ;;  %s259_s3 = scalar_lea.sflag [#allocation4], %s734_s25  ;;  %s522_s7 = scalar_lea.vmem %s753_s19, 512 }
  0x3c   : > { %v236_v8 = vsub.f32 %v232_v6, %v228_v5  ;;  %v233_v10 = vld [vmem:[%s190_s16 + $0x18] sm:$0xff]  ;;  %p523_p8 = scmp.ne.s32.totalorder %s753_s19, %s522_s7  ;;  %s610_s12 = smov [#allocation7]  }
  0x3d   : > { %v238_v11 = vand.u32 2147483647, %v234_v3  ;;  %v237_v12 = vsub.f32 %v233_v10, %v229_v9  ;;  %v239_v13 = vand.u32 2147483647, %v235_v7  ;;  %s526_s8 = sshll.u32 %s610_s12, 4  ;;  %s527_s8 = int_to_ptr.vmem [resolvable:$false] %s526_s8 }
  0x3e   : > { %v240_v14 = vand.u32 2147483647, %v236_v8  ;;  %p524_p0 = pnand %p523_p8, %p677_p9  ;;  %s528_s30 = scalar_lea.vmem %s527_s8, 1024 }
  0x3f   : > { %v241_v15 = vand.u32 2147483647, %v237_v12  ;;  %254 = vst [vmem:[%s215_s18] sm:$0xff] %v238_v11  ;;  %255 = vst [vmem:[%s215_s18 + $0x8] sm:$0xff] %v239_v13  ;;  %p529_p13 = scmp.lt.s32.totalorder %s753_s19, %s527_s8  ;;  %p530_p5 = scmp.lt.s32.totalorder %s528_s30, %s522_s7 }
  0x40   : > { %256 = vst [vmem:[%s215_s18 + $0x10] sm:$0xff] %v240_v14  ;;  %p525_p3 = pneg %p524_p0 }
  0x41   : > { %257 = vst [vmem:[%s215_s18 + $0x18] sm:$0xff] %v241_v15  ;;  %p531_p12 = por %p530_p5, %p529_p13 }
  0x43   : > { %p532_p6 = pnand %p531_p12, %p525_p3 }
  0x45   : > { %535 = shalt.err (!%p532_p6)
}
  0x46   : > { %s536_s4 = scalar_lea.hbm %s751_s29, 512  ;;  %s540_s26 = scalar_lea.hbm %s801_s2, 1024 }
  0x47   : > { %p537_p7 = scmp.ne.s32.totalorder %s751_s29, %s536_s4  ;;  %p541_p4 = scmp.lt.s32.totalorder %s751_s29, %s801_s2 }
  0x48   : > { %p542_p10 = scmp.lt.s32.totalorder %s540_s26, %s536_s4 }
  0x49   : > { %p538_p1 = pnand %p537_p7, %p677_p9 }
  0x4a   : > { %p543_p8 = por %p542_p10, %p541_p4 }
  0x4b   : > { %p539_p2 = pneg %p538_p1 }
  0x4d   : > { %p544_p0 = pnand %p543_p8, %p539_p2 }
  0x4f   : > { %547 = shalt.err (!%p544_p0)
}
  0x50   : > { %402 = dma.vmem_to_hbm [thread:$0]  (%p677_p9), %s753_s19, 512, %s751_s29, %s259_s3  }
  0x51 PF: > { %s285_s5 = sand.u32 1, %s586_s9   ;;  %p808_p3 = scmp.ge.s32.totalorder %s606_s14, 2 }
  0x52   : > { %s286_s16 = scalar_lea.sflag [#allocation4], %s285_s5 }
  0x53   : > { %p412_p13 = pnand %p808_p3, %p684_p11 }
  0x55   : > { %p413_p5 = pneg %p412_p13 }
  0x57   : > { %581 = dma.done.wait (%p413_p5), %s286_s16, 512  }
  0x58   : > { %583 = vsyncadd (%p413_p5), %s286_s16, 4294966784  ;;  %s21_s14 = sadd.s32 1, %s606_s14   ;;  %s809_s9 = smov %s590_s10 }
  0x59   : > { %p18_p12 = scmp.ge.s32.totalorder %s21_s14, 4   ;;  %s810_s10 = smov %s594_s11 }
  0x5a   : > { %s811_s11 = smov %s682_s23  ;;  %s812_s12 = smov %s602_s13 }
  0x5b   : > { %s813_s13 = smov %s815_s17  ;;  %20 = sbr.rel (!%p18_p12) target bundleno = 8 (0x8), region = 90 }
  0x60   :  { %291 = vsyncpa [#allocation3], 1 }
  0x61   :  { %293 = vsyncpa [#allocation3 + $0x1], 1 }
  0x62   :  { %294 = vsyncpa [#allocation6], 1 }
  0x63   :  { %296 = vsyncpa [#allocation6 + $0x1], 1 }
  0x64   :  { %297 = vsyncpa [#allocation4], 1 }
  0x65   :  { %299 = vsyncpa [#allocation4 + $0x1], 1 }

</bundles_post_ra>
